<compile_context>
chip_gen: v6e
topology: v6e:2x2x1
jax: 0.10.0
libtpu: 0.0.40
codegen_flags: <defaults>
</compile_context>

<pallas_src>
import jax
import jax.numpy as jnp
from jax.experimental import pallas as pl
from jax.experimental.pallas import tpu as pltpu


_LANES = 128


def _round_up(v, m):
    return ((v + m - 1) // m) * m


def _chip_params():
    """Best-effort, trace-time chip-generation query with safe fallbacks."""
    kind = ""
    try:
        kind = jax.devices()[0].device_kind.lower()
    except Exception:
        pass

    is_v7 = ("v7" in kind) or ("tpu7" in kind)
    is_v6 = "v6" in kind
    # Chips where a "parallel" grid axis is sharded across >1 TensorCore.
    multi_tc = is_v7 or ("v4" in kind) or ("v5p" in kind)

    if is_v7:
        # High HBM BW, but only 64 MiB VMEM: 8 MiB blocks, 48 MiB scoped limit
        # (2 double-buffered streams x 8 MiB = 32 MiB, comfortable headroom).
        max_block_bytes = 8 * 1024 * 1024
        vmem_limit = 48 * 1024 * 1024
    else:
        # v5e / v6e: 2 MiB blocks already amortize the per-step overhead at
        # 0.8-1.4 TB/s; 128 MiB physical VMEM so 64 MiB scoped limit is safe.
        max_block_bytes = 2 * 1024 * 1024
        vmem_limit = 64 * 1024 * 1024

    # Prefer the real VMEM capacity when the query is available.
    try:
        vmem_cap = pltpu.get_tpu_info().vmem_capacity_bytes
        vmem_limit = min(vmem_limit, (vmem_cap * 3) // 4)
    except Exception:
        pass

    # bf16 VPU/EUP exist on v6e/v7x; v5e (and unknown chips) compute in f32.
    bf16_native = is_v6 or is_v7
    return max_block_bytes, vmem_limit, multi_tc, bf16_native


def _make_kernel(compute_dtype):
    def _kernel(x_ref, o_ref):
        x = x_ref[...].astype(compute_dtype)
        o_ref[...] = jax.nn.sigmoid(x).astype(o_ref.dtype)
    return _kernel


def qsigmoid(x):
    """Element-wise (split-type) quaternion sigmoid via a Pallas TPU kernel.

    Accepts any shape/dtype (NCHW with C % 4 == 0 expected); returns the same
    shape/dtype.
    """
    orig_shape = x.shape
    orig_dtype = jnp.dtype(x.dtype)
    n = x.size
    if n == 0:
        return x

    itemsize = orig_dtype.itemsize
    max_block_bytes, vmem_limit, multi_tc, bf16_native = _chip_params()

    flat = jnp.ravel(x)
    # Only the 128-lane reshape constraint requires padding; partial edge
    # blocks along the row axis are masked by the pipeline automatically.
    padded = _round_up(n, _LANES)
    needs_pad = padded != n
    if needs_pad:
        # TODO(synk): rare (< one vreg row of tail); this path still pays a
        # full pad + slice HBM round-trip.
        flat = jnp.pad(flat, (0, padded - n))
    rows = padded // _LANES
    slab = flat.reshape(rows, _LANES)

    # Tile rows: largest block within the per-generation budget (mem-bound),
    # multiple of 8 sublanes unless a single full-extent block is used.
    cap_rows = max(8, (max_block_bytes // (_LANES * itemsize)) // 8 * 8)
    if multi_tc and rows >= 16:
        # Balance across TensorCores: even number of grid steps, equal sizes.
        grid_n = max(2, _round_up(pl.cdiv(rows, cap_rows), 2))
        tile_rows = min(cap_rows, _round_up(pl.cdiv(rows, grid_n), 8))
    elif rows <= cap_rows:
        tile_rows = rows  # single block covering the full row extent
    else:
        tile_rows = cap_rows
    grid = (pl.cdiv(rows, tile_rows),)

    if orig_dtype == jnp.dtype(jnp.bfloat16) and bf16_native:
        compute_dtype = jnp.bfloat16   # native bf16 VPU/EUP on v6e/v7x
    else:
        compute_dtype = jnp.float32    # safe everywhere (v5e has no bf16 EUP)

    out = pl.pallas_call(
        _make_kernel(compute_dtype),
        out_shape=jax.ShapeDtypeStruct((rows, _LANES), orig_dtype),
        grid=grid,
        in_specs=[pl.BlockSpec((tile_rows, _LANES), lambda i: (i, 0))],
        out_specs=pl.BlockSpec((tile_rows, _LANES), lambda i: (i, 0)),
        compiler_params=pltpu.CompilerParams(
            dimension_semantics=("parallel",),
            vmem_limit_bytes=vmem_limit,
        ),
        cost_estimate=pl.CostEstimate(
            flops=0,
            transcendentals=n,
            bytes_accessed=2 * n * itemsize,
        ),
    )(slab)

    if needs_pad:
        return out.reshape(-1)[:n].reshape(orig_shape)
    return out.reshape(orig_shape)   # contiguous reshape: free


if __name__ == "__main__":
    key = jax.random.PRNGKey(0)
    # NCHW, C=4 (one quaternion: r, i, j, k), small spatial dims.
    x = jax.random.normal(key, (2, 4, 16, 16), dtype=jnp.float32)

    y = qsigmoid(x)
    jax.block_until_ready(y)

    # Sanity check against plain-JAX reference (element-wise sigmoid).
    ref = jax.nn.sigmoid(x)
    assert y.shape == x.shape and y.dtype == x.dtype
    assert jnp.max(jnp.abs(y - ref)) < 1e-5

    print("KERNEL_OK")
</pallas_src>

<mosaic_0001>
module attributes {stable_mosaic.version = 11 : i64} {
  func.func @_kernel(%arg0: i32, %arg1: memref<16x128xf32, #tpu.memory_space<vmem>>, %arg2: memref<16x128xf32, #tpu.memory_space<vmem>>) attributes {dimension_semantics = [#tpu.dimension_semantics<parallel>], iteration_bounds = array<i64: 1>, scalar_prefetch = 0 : i64, scratch_operands = 0 : i64, tpu.core_type = #tpu.core_type<tc>, window_params = [{transform_indices = @transform_0, window_bounds = array<i64: 16, 128>}, {transform_indices = @transform_1, window_bounds = array<i64: 16, 128>}]} {
    %c0 = arith.constant 0 : index
    %c0_0 = arith.constant 0 : index
    %0 = vector.load %arg1[%c0, %c0_0] : memref<16x128xf32, #tpu.memory_space<vmem>>, vector<16x128xf32>
    %1 = arith.negf %0 : vector<16x128xf32>
    %2 = math.exp %1 : vector<16x128xf32>
    %cst = arith.constant 1.000000e+00 : f32
    %3 = vector.broadcast %cst : f32 to vector<16x128xf32>
    %4 = arith.addf %3, %2 : vector<16x128xf32>
    %5 = arith.divf %3, %4 : vector<16x128xf32>
    %c0_1 = arith.constant 0 : index
    %c0_2 = arith.constant 0 : index
    %6 = vector.load %arg2[%c0_1, %c0_2] : memref<16x128xf32, #tpu.memory_space<vmem>>, vector<16x128xf32>
    tpu.vector_store %arg2[%c0_1, %c0_2], %5 {strides = array<i32>} : memref<16x128xf32, #tpu.memory_space<vmem>>, vector<16x128xf32>,
    return
  }
  func.func @transform_0(%arg0: i32) -> (i32, i32) {
    %c0_i32 = arith.constant 0 : i32
    %c0_i32_0 = arith.constant 0 : i32
    return %arg0, %c0_i32 : i32, i32
  }
  func.func @transform_1(%arg0: i32) -> (i32, i32) {
    %c0_i32 = arith.constant 0 : i32
    %c0_i32_0 = arith.constant 0 : i32
    return %arg0, %c0_i32 : i32, i32
  }
}

</mosaic_0001>

<bundles_post_ra>
// kernel: tpu_custom_call.1
= control target key start
LH: loop header
LB: loop body
LE: loop exit
PB: predicated region body
PF: predicated region fallthrough
CT: control target
= control target key end

     0   :  { %6 = vsyncpa [#allocation3], 0  ;;  %s140_s0 = inlined_call_operand.hbm [shape: f32[16,128], index: 0, kind: input, shape index: {}]   ;;  %s141_s1 = inlined_call_operand.hbm [shape: f32[16,128], index: 1, kind: output, shape index: {}]  }
   0x1   :  { %7 = vsyncpa [#allocation4], 0  ;;  %s114_s6 = smov [#allocation2]  }
   0x2   :  { %s13_s7 = sshll.u32 %s114_s6, 4  ;;  %s14_s7 = int_to_ptr.vmem [resolvable:$true] %s13_s7 }
   0x3   :  { %s78_s8 = scalar_lea.vmem %s14_s7, 256  ;;  %p83_p1 = scmp.lt.s32.totalorder %s14_s7, %s14_s7 }
   0x4   :  { %p79_p0 = scmp.ne.s32.totalorder %s14_s7, %s78_s8  ;;  %p84_p2 = scmp.lt.s32.totalorder %s78_s8, %s78_s8 }
   0x6   :  { %p85_p3 = por %p84_p2, %p83_p1 }
   0x8   :  { %p86_p4 = pnand %p85_p3, %p79_p0 }
   0xa   :  { %89 = shalt.err (!%p86_p4)
}
   0xb   :  { %s115_s9 = smov 128   ;;  %s116_s10 = smov 8  }
   0xc   :  { %19 = dma.hbm_to_vmem [thread:$0]  %s140_s0, 256, %s14_s7, [#allocation3], %s115_s9, %s115_s9, %s116_s10  }
   0xd   :  { %110 = dma.done.wait [#allocation3], 256  }
   0xe   :  { %111 = vsyncadd [#allocation3], 4294967040  ;;  %v23_v0 = vld [vmem:[#allocation2] sm:$0xff]  ;;  %v24_v1 = vld [vmem:[#allocation2 + $0x8] sm:$0xff]  ;;  %s117_s13 = smov [#allocation5]  }
   0xf   :  { %v56_v2 = vmul.f32 -1.442695, %v23_v0  ;;  %v57_v3 = vmul.f32 -1.442695, %v24_v1  ;;  %s44_s14 = sshll.u32 %s117_s13, 4  ;;  %s45_s14 = int_to_ptr.vmem [resolvable:$true] %s44_s14 }
  0x10   :  { %s90_s0 = scalar_lea.vmem %s45_s14, 256  ;;  %p95_p6 = scmp.lt.s32.totalorder %s45_s14, %s45_s14 }
  0x11   :  { %62 = vpow2.f32 %v56_v2  ;;  %p91_p5 = scmp.ne.s32.totalorder %s45_s14, %s90_s0  ;;  %p96_p7 = scmp.lt.s32.totalorder %s90_s0, %s90_s0 }
  0x12   :  { %64 = vpow2.f32 %v57_v3 }
  0x13   :  { %p97_p8 = por %p96_p7, %p95_p6 }
  0x15   :  { %p98_p9 = pnand %p97_p8, %p91_p5 }
  0x1e   :  { %v63_v4 = vpop.eup %62 }
  0x1f   :  { %v65_v5 = vpop.eup %64  ;;  %v31_v6 = vadd.f32 1.0, %v63_v4 }
  0x20   :  { %v32_v7 = vadd.f32 1.0, %v65_v5 }
  0x21   :  { %66 = vrcp.f32 %v31_v6 }
  0x22   :  { %68 = vrcp.f32 %v32_v7 }
  0x2e   :  { %v67_v8 = vpop.eup %66 }
  0x2f   :  { %v69_v9 = vpop.eup %68  ;;  %37 = vst [vmem:[#allocation5] sm:$0xff] %v67_v8 }
  0x30   :  { %38 = vst [vmem:[#allocation5 + $0x8] sm:$0xff] %v69_v9 }
  0x31   :  { %101 = shalt.err (!%p98_p9)
}
  0x32   :  { %50 = dma.vmem_to_hbm [thread:$0]  %s45_s14, 256, %s141_s1, [#allocation4], %s115_s9, %s115_s9, %s116_s10  }
  0x33   :  { %112 = dma.done.wait [#allocation4], 256  }
  0x34   :  { %113 = vsyncadd [#allocation4], 4294967040 }
  0x35   :  { %54 = vsyncpa [#allocation3], 1 }
  0x36   :  { %55 = vsyncpa [#allocation4], 1 }

</bundles_post_ra>
